<compile_context>
chip_gen: v7x
topology: tpu7x:2x2x1
jax: 0.10.0
libtpu: 0.0.40
codegen_flags: <defaults>
</compile_context>

<pallas_src>
import math
import jax
import jax.numpy as jnp
from jax import lax
from jax.experimental import pallas as pl
from jax.experimental.pallas import tpu as pltpu

SEQ = 103          # dense1 input features (seq dim after transpose)
HIDDEN = 768       # dense2 input features
OUT = 20           # dense2 output features
NEG_SLOPE = 0.01   # nn.LeakyReLU default
B_TILE = 32        # batch rows per grid step (double-buffered embeds ~19.3 MiB,
                   # fits the 48 MiB scoped-VMEM limit set below on all chips)


def _classifier_kernel(e_ref, w1_ref, b1_ref, w2t_ref, b2_ref, o_ref, feats_ref):
    # e_ref:     (bt, SEQ, HIDDEN)  current batch tile (last block may be padded)
    # w1_ref:    (SEQ, 1)           dense1.weight, sublane-major
    # b1_ref:    (1, 1)             dense1.bias
    # w2t_ref:   (HIDDEN, OUT)      dense2.weight transposed
    # b2_ref:    (1, OUT)           dense2.bias
    # o_ref:     (bt, OUT)
    # feats_ref: (bt, HIDDEN)       VMEM scratch
    bt = e_ref.shape[0]
    w1 = w1_ref[...]                                     # (SEQ, 1)

    # dense1 per batch row: feats[b, d] = sum_s w1[s] * e[b, s, d]
    # Loop keeps the live set at (SEQ, HIDDEN) ~316 KiB instead of materializing
    # the full (bt, SEQ, HIDDEN) product.
    def body(b, carry):
        eb = e_ref[b]                                    # (SEQ, HIDDEN)
        row = jnp.sum(eb * w1, axis=0, keepdims=True)    # (1, HIDDEN), f32
        feats_ref[pl.ds(b, 1), :] = row
        return carry

    lax.fori_loop(0, bt, body, 0)

    feats = feats_ref[...] + b1_ref[...]                 # (bt, HIDDEN) + (1, 1)

    # LeakyReLU (default negative_slope = 0.01)
    feats = jnp.where(feats >= 0, feats, NEG_SLOPE * feats)

    # dense2: one (bt, HIDDEN) @ (HIDDEN, OUT) MXU matmul for the whole tile
    out = jnp.dot(feats, w2t_ref[...],
                  preferred_element_type=jnp.float32) + b2_ref[...]   # (bt, OUT)
    o_ref[...] = out.astype(o_ref.dtype)


def classifier_forward(embeds, w1, b1, w2, b2, *, b_tile=B_TILE):
    """embeds: (B, SEQ, HIDDEN) f32. Returns (B, OUT) f32."""
    B = embeds.shape[0]
    bt = min(b_tile, B)                      # tiny batches: one full-array block
    num_blocks = pl.cdiv(B, bt)
    B_pad = num_blocks * bt                  # output kept padded; sliced at the end

    w1_2d = w1.reshape(SEQ, 1)               # dense1.weight -> (103, 1) sublane-major
    b1_2d = b1.reshape(1, 1)                 # dense1.bias
    w2t = jnp.transpose(w2)                  # (HIDDEN, OUT)
    b2_2d = b2.reshape(1, OUT)

    bytes_accessed = int(
        B * SEQ * HIDDEN * 4                 # embeds stream
        + (SEQ + 1 + HIDDEN * OUT + OUT) * 4 # weights / biases
        + B_pad * OUT * 4                    # output
    )
    flops = int(2 * B * (SEQ * HIDDEN + HIDDEN * OUT))

    out = pl.pallas_call(
        _classifier_kernel,
        out_shape=jax.ShapeDtypeStruct((B_pad, OUT), jnp.float32),
        grid_spec=pltpu.PrefetchScalarGridSpec(
            num_scalar_prefetch=0,
            grid=(num_blocks,),
            in_specs=[
                pl.BlockSpec((bt, SEQ, HIDDEN), lambda b: (b, 0, 0)),
                pl.BlockSpec((SEQ, 1), lambda b: (0, 0)),
                pl.BlockSpec((1, 1), lambda b: (0, 0)),
                pl.BlockSpec((HIDDEN, OUT), lambda b: (0, 0)),
                pl.BlockSpec((1, OUT), lambda b: (0, 0)),
            ],
            out_specs=pl.BlockSpec((bt, OUT), lambda b: (b, 0)),
            scratch_shapes=[pltpu.VMEM((bt, HIDDEN), jnp.float32)],
        ),
        compiler_params=pltpu.CompilerParams(
            dimension_semantics=("parallel",),
            vmem_limit_bytes=48 * 1024 * 1024,
        ),
        cost_estimate=pl.CostEstimate(
            flops=flops, transcendentals=0, bytes_accessed=bytes_accessed),
    )(embeds, w1_2d, b1_2d, w2t, b2_2d)

    return out[:B] if B_pad != B else out


def _init_linear(key, out_features, in_features):
    """Deterministic init mimicking nn.Linear default (kaiming-uniform-ish)."""
    kw, kb = jax.random.split(key)
    bound = 1.0 / math.sqrt(in_features)
    w = jax.random.uniform(kw, (out_features, in_features), jnp.float32, -bound, bound)
    b = jax.random.uniform(kb, (out_features,), jnp.float32, -bound, bound)
    return w, b


def _reference(embeds, w1, b1, w2, b2):
    image_embeds = jnp.transpose(embeds, (0, 2, 1))              # (B, 768, 103)
    feats = image_embeds @ w1.T + b1                             # (B, 768, 1)
    feats = jnp.squeeze(jnp.transpose(feats, (0, 2, 1)), axis=1) # (B, 768)
    feats = jnp.where(feats >= 0, feats, NEG_SLOPE * feats)
    return feats @ w2.T + b2                                     # (B, 20)


if __name__ == "__main__":
    key = jax.random.PRNGKey(0)
    k_in, k1, k2 = jax.random.split(key, 3)

    B = 2
    embeds = jax.random.normal(k_in, (B, SEQ, HIDDEN), jnp.float32)

    # dense1: Linear(103, 1); dense2: Linear(768, 20)
    # (dense1_i / dense1_t are defined in __init__ but unused in forward)
    w1, b1 = _init_linear(k1, 1, SEQ)
    w2, b2 = _init_linear(k2, OUT, HIDDEN)

    out = classifier_forward(embeds, w1, b1, w2, b2)
    out = jax.block_until_ready(out)

    ref = _reference(embeds, w1, b1, w2, b2)
    assert out.shape == (B, OUT)
    assert jnp.allclose(out, ref, atol=1e-4, rtol=1e-4), "mismatch vs reference"

    print("KERNEL_OK")
</pallas_src>

<mosaic_0001>
module attributes {stable_mosaic.version = 11 : i64} {
  func.func @_classifier_kernel(%arg0: i32, %arg1: memref<2x103x768xf32, #tpu.memory_space<vmem>>, %arg2: memref<103x1xf32, #tpu.memory_space<vmem>>, %arg3: memref<1x1xf32, #tpu.memory_space<vmem>>, %arg4: memref<768x20xf32, #tpu.memory_space<vmem>>, %arg5: memref<1x20xf32, #tpu.memory_space<vmem>>, %arg6: memref<2x20xf32, #tpu.memory_space<vmem>>, %arg7: memref<2x768xf32, #tpu.memory_space<vmem>>) attributes {dimension_semantics = [#tpu.dimension_semantics<parallel>], iteration_bounds = array<i64: 1>, scalar_prefetch = 0 : i64, scratch_operands = 1 : i64, tpu.core_type = #tpu.core_type<tc>, window_params = [{transform_indices = @transform_0, window_bounds = array<i64: 2, 103, 768>}, {pipeline_mode = #tpu.pipeline_mode<synchronous>, transform_indices = @transform_1, window_bounds = array<i64: 103, 1>}, {pipeline_mode = #tpu.pipeline_mode<synchronous>, transform_indices = @transform_2, window_bounds = array<i64: 1, 1>}, {pipeline_mode = #tpu.pipeline_mode<synchronous>, transform_indices = @transform_3, window_bounds = array<i64: 768, 20>}, {pipeline_mode = #tpu.pipeline_mode<synchronous>, transform_indices = @transform_4, window_bounds = array<i64: 1, 20>}, {transform_indices = @transform_5, window_bounds = array<i64: 2, 20>}]} {
    %c0 = arith.constant 0 : index
    %c0_0 = arith.constant 0 : index
    %0 = vector.load %arg2[%c0, %c0_0] : memref<103x1xf32, #tpu.memory_space<vmem>>, vector<103x1xf32>
    %c0_i32 = arith.constant 0 : i32
    %c2_i32 = arith.constant 2 : i32
    %1 = arith.addi %c0_i32, %c2_i32 : i32
    %c1_i32 = arith.constant 1 : i32
    scf.for %arg8 = %c0_i32 to %1 step %c1_i32  : i32 {
      %17 = arith.index_cast %arg8 : i32 to index
      %c0_14 = arith.constant 0 : index
      %c0_15 = arith.constant 0 : index
      %18 = vector.load %arg1[%17, %c0_14, %c0_15] : memref<2x103x768xf32, #tpu.memory_space<vmem>>, vector<1x103x768xf32>
      %19 = vector.shape_cast %18 : vector<1x103x768xf32> to vector<103x768xf32>
      %20 = vector.broadcast %0 : vector<103x1xf32> to vector<103x768xf32>
      %21 = arith.mulf %19, %20 : vector<103x768xf32>
      %cst_16 = arith.constant dense<0.000000e+00> : vector<768xf32>
      %22 = vector.multi_reduction <add>, %21, %cst_16 [0] : vector<103x768xf32> to vector<768xf32>
      %23 = vector.shape_cast %22 : vector<768xf32> to vector<1x768xf32>
      %24 = arith.index_cast %arg8 : i32 to index
      %c0_17 = arith.constant 0 : index
      %25 = vector.load %arg7[%24, %c0_17] : memref<2x768xf32, #tpu.memory_space<vmem>>, vector<1x768xf32>
      tpu.vector_store %arg7[%24, %c0_17], %23 {strides = array<i32>} : memref<2x768xf32, #tpu.memory_space<vmem>>, vector<1x768xf32>,
    }
    %c2_i32_1 = arith.constant 2 : i32
    %c0_2 = arith.constant 0 : index
    %c0_3 = arith.constant 0 : index
    %2 = vector.load %arg7[%c0_2, %c0_3] : memref<2x768xf32, #tpu.memory_space<vmem>>, vector<2x768xf32>
    %c0_4 = arith.constant 0 : index
    %c0_5 = arith.constant 0 : index
    %3 = vector.load %arg3[%c0_4, %c0_5] : memref<1x1xf32, #tpu.memory_space<vmem>>, vector<1x1xf32>
    %4 = vector.broadcast %3 : vector<1x1xf32> to vector<2x768xf32>
    %5 = arith.addf %2, %4 : vector<2x768xf32>
    %cst = arith.constant 0.000000e+00 : f32
    %6 = vector.broadcast %cst : f32 to vector<2x768xf32>
    %7 = arith.cmpf oge, %5, %6 : vector<2x768xf32>
    %cst_6 = arith.constant 0.00999999977 : f32
    %8 = vector.broadcast %cst_6 : f32 to vector<2x768xf32>
    %9 = arith.mulf %8, %5 : vector<2x768xf32>
    %10 = arith.select %7, %5, %9 : vector<2x768xi1>, vector<2x768xf32>
    %c0_7 = arith.constant 0 : index
    %c0_8 = arith.constant 0 : index
    %11 = vector.load %arg4[%c0_7, %c0_8] : memref<768x20xf32, #tpu.memory_space<vmem>>, vector<768x20xf32>
    %cst_9 = arith.constant dense<0.000000e+00> : vector<2x20xf32>
    %12 = tpu.matmul %10, %11, %cst_9 {dimension_numbers = #tpu.dot_dimension_numbers<[1], [0], [0], [1], [0, 0, 1, 1], [], []>} : vector<2x768xf32>, vector<768x20xf32>, vector<2x20xf32> -> vector<2x20xf32>
    %c0_10 = arith.constant 0 : index
    %c0_11 = arith.constant 0 : index
    %13 = vector.load %arg5[%c0_10, %c0_11] : memref<1x20xf32, #tpu.memory_space<vmem>>, vector<1x20xf32>
    %14 = vector.broadcast %13 : vector<1x20xf32> to vector<2x20xf32>
    %15 = arith.addf %12, %14 : vector<2x20xf32>
    %c0_12 = arith.constant 0 : index
    %c0_13 = arith.constant 0 : index
    %16 = vector.load %arg6[%c0_12, %c0_13] : memref<2x20xf32, #tpu.memory_space<vmem>>, vector<2x20xf32>
    tpu.vector_store %arg6[%c0_12, %c0_13], %15 {strides = array<i32>} : memref<2x20xf32, #tpu.memory_space<vmem>>, vector<2x20xf32>,
    return
  }
  func.func @transform_0(%arg0: i32) -> (i32, i32, i32) {
    %c0_i32 = arith.constant 0 : i32
    %c0_i32_0 = arith.constant 0 : i32
    %c0_i32_1 = arith.constant 0 : i32
    return %arg0, %c0_i32, %c0_i32_0 : i32, i32, i32
  }
  func.func @transform_1(%arg0: i32) -> (i32, i32) {
    %c0_i32 = arith.constant 0 : i32
    %c0_i32_0 = arith.constant 0 : i32
    %c0_i32_1 = arith.constant 0 : i32
    return %c0_i32, %c0_i32_0 : i32, i32
  }
  func.func @transform_2(%arg0: i32) -> (i32, i32) {
    %c0_i32 = arith.constant 0 : i32
    %c0_i32_0 = arith.constant 0 : i32
    %c0_i32_1 = arith.constant 0 : i32
    return %c0_i32, %c0_i32_0 : i32, i32
  }
  func.func @transform_3(%arg0: i32) -> (i32, i32) {
    %c0_i32 = arith.constant 0 : i32
    %c0_i32_0 = arith.constant 0 : i32
    %c0_i32_1 = arith.constant 0 : i32
    return %c0_i32, %c0_i32_0 : i32, i32
  }
  func.func @transform_4(%arg0: i32) -> (i32, i32) {
    %c0_i32 = arith.constant 0 : i32
    %c0_i32_0 = arith.constant 0 : i32
    %c0_i32_1 = arith.constant 0 : i32
    return %c0_i32, %c0_i32_0 : i32, i32
  }
  func.func @transform_5(%arg0: i32) -> (i32, i32) {
    %c0_i32 = arith.constant 0 : i32
    %c0_i32_0 = arith.constant 0 : i32
    return %arg0, %c0_i32 : i32, i32
  }
}

</mosaic_0001>

<bundles_post_ra>
// kernel: tpu_custom_call.1
= control target key start
LH: loop header
LB: loop body
LE: loop exit
PB: predicated region body
PF: predicated region fallthrough
CT: control target
= control target key end

     0   :  { %s1633_s0 = inlined_call_operand.vmem [shape: f32[2,103,768], index: 0, kind: input, shape index: {}]   ;;  %s1634_s1 = inlined_call_operand.vmem [shape: f32[103,1], index: 1, kind: input, shape index: {}]   ;;  %s1635_s2 = inlined_call_operand.<no memory space> [shape: f32[1,1], index: 2, kind: input, shape index: {}]   ;;  %s1636_s3 = inlined_call_operand.vmem [shape: f32[768,20], index: 3, kind: input, shape index: {}]   ;;  %s1637_s4 = inlined_call_operand.vmem [shape: f32[1,20], index: 4, kind: input, shape index: {}]   ;;  %s1638_s5 = inlined_call_operand.hbm [shape: f32[2,20], index: 5, kind: output, shape index: {}]  }
   0x1   :  { %v10_v0 = vstv %s1635_s2 }
   0x2   :  { %11 = vst [vmem:[#allocation3] sm:$0x1] %v10_v0 }
   0x3   :  { %12 = vsyncpa [#allocation5], 0  ;;  %v1128_v1 = vld [vmem:[%s1634_s1] sm:$0xff]  ;;  %v1133_v2 = vld [vmem:[%s1634_s1 + $0x8] sm:$0xff]  ;;  %s1190_s20 = smov 0  }
   0x4   :  { %v1138_v3 = vld [vmem:[%s1634_s1 + $0x10] sm:$0xff]  ;;  %v1143_v4 = vld [vmem:[%s1634_s1 + $0x18] sm:$0xff]  ;;  %v1148_v5 = vld [vmem:[%s1634_s1 + $0x20] sm:$0xff] }
   0x5   :  { %v1153_v6 = vld [vmem:[%s1634_s1 + $0x28] sm:$0xff]  ;;  %v1158_v7 = vld [vmem:[%s1634_s1 + $0x30] sm:$0xff]  ;;  %v1163_v8 = vld [vmem:[%s1634_s1 + $0x38] sm:$0xff] }
   0x6   :  { %v1168_v9 = vld [vmem:[%s1634_s1 + $0x40] sm:$0xff]  ;;  %v1173_v10 = vld [vmem:[%s1634_s1 + $0x48] sm:$0xff]  ;;  %v1178_v11 = vld [vmem:[%s1634_s1 + $0x50] sm:$0xff] }
   0x7   :  { %v1183_v12 = vld [vmem:[%s1634_s1 + $0x58] sm:$0xff]  ;;  %v1188_v13 = vld [vmem:[%s1634_s1 + $0x60] sm:$0x7f] }
   0x8 LB: > { %v1087_v14 = vmov 0   ;;  %s837_s1 = smul.u32 624, %s1085_s20  ;;  %vm277_vm0 = vcmask 1046528   ;;  %s432_s24 = sshra.s32 %s1085_s20, 1  ;;  %s1085_s20 = sphi %s1190_s20, %s41_s20  }
   0x9   : > { %1053 = vset.pattern.permute.xlu1 %v1087_v14  ;;  %1052 = vset.pattern.permute.xlu0 %v1087_v14  ;;  %s834_s25 = smul.u32 12, %s432_s24  ;;  %s435_s26 = sand.u32 1, %s1085_s20 }
   0xa   : > { %135 = vperm.xlu1 %1053, %v1138_v3   ;;  %125 = vperm.xlu0 %1052, %v1128_v1   ;;  %s1212_s23 = scalar_lea.vmem %s1633_s0, %s837_s1  ;;  %s41_s20 = sadd.s32 1, %s1085_s20  }
   0xb   : > { %v57_v15 = vld [vmem:[%s1212_s23 + $0x60] sm:$0xff]  ;;  %v58_v16 = vld [vmem:[%s1212_s23 + $0x68] sm:$0xff]  ;;  %v59_v17 = vld [vmem:[%s1212_s23 + $0x70] sm:$0xff]  ;;  %s438_s27 = sadd.s32 %s834_s25, %s435_s26  ;;  %p38_p0 = scmp.ge.s32.totalorder %s41_s20, 2  }
   0xc   : > { %v60_v18 = vld [vmem:[%s1212_s23 + $0x78] sm:$0xff]  ;;  %v61_v19 = vld [vmem:[%s1212_s23 + $0x80] sm:$0xff]  ;;  %v62_v20 = vld [vmem:[%s1212_s23 + $0x88] sm:$0xff]  ;;  %s439_s2 = scalar_lea.vmem [#allocation2], %s438_s27  ;;  %vm807_vm4 = vcmask (%p38_p0), 156672  }
   0xd   : > { %v45_v21 = vld [vmem:[%s1212_s23] sm:$0xff]  ;;  %v46_v24 = vld [vmem:[%s1212_s23 + $0x8] sm:$0xff]  ;;  %v47_v25 = vld [vmem:[%s1212_s23 + $0x10] sm:$0xff] }
   0xe   : > { %140 = vperm.xlu1 %1053, %v1143_v4   ;;  %130 = vperm.xlu0 %1052, %v1133_v2   ;;  %v48_v26 = vld [vmem:[%s1212_s23 + $0x18] sm:$0xff]  ;;  %v49_v27 = vld [vmem:[%s1212_s23 + $0x20] sm:$0xff]  ;;  %v50_v28 = vld [vmem:[%s1212_s23 + $0x28] sm:$0xff] }
   0xf   : > { %v63_v29 = vld [vmem:[%s1212_s23 + $0x90] sm:$0xff]  ;;  %v64_v32 = vld [vmem:[%s1212_s23 + $0x98] sm:$0xff]  ;;  %v65_v33 = vld [vmem:[%s1212_s23 + $0xa0] sm:$0xff] }
  0x10   : > { %v66_v34 = vld [vmem:[%s1212_s23 + $0xa8] sm:$0xff]  ;;  %v51_v39 = vld [vmem:[%s1212_s23 + $0x30] sm:$0xff]  ;;  %v52_v40 = vld [vmem:[%s1212_s23 + $0x38] sm:$0xff] }
  0x11   : > { %v53_v41 = vld [vmem:[%s1212_s23 + $0x40] sm:$0xff]  ;;  %v54_v48 = vld [vmem:[%s1212_s23 + $0x48] sm:$0xff]  ;;  %v55_v49 = vld [vmem:[%s1212_s23 + $0x50] sm:$0xff] }
  0x12   : > { %150 = vperm.xlu1 %1053, %v1153_v6   ;;  %145 = vperm.xlu0 %1052, %v1148_v5   ;;  %v56_v50 = vld [vmem:[%s1212_s23 + $0x58] sm:$0xff]  ;;  %v67_v53 = vld [vmem:[%s1212_s23 + $0xb0] sm:$0xff]  ;;  %v509_v1 = vld [vmem:[%s1636_s3 + $0x180] sm:$0xff] (%p38_p0) }
  0x13   : > { %v68_v54 = vld [vmem:[%s1212_s23 + $0xb8] sm:$0xff]  ;;  %v75_v14 = vld [vmem:[%s1212_s23 + $0xf0] sm:$0xff]  ;;  %v510_v3 = vld [vmem:[%s1636_s3 + $0x188] sm:$0xff] (%p38_p0) }
  0x14   :  { %v479_v4 = vld [vmem:[%s1636_s3 + $0x90] sm:$0xff] (%p38_p0)  ;;  %v480_v5 = vld [vmem:[%s1636_s3 + $0x98] sm:$0xff] (%p38_p0)  ;;  %v975_v6 = vpack.c.bf16 (%p38_p0), %v510_v3, %v509_v1  ;;  %v490_v1 = vld [vmem:[%s1636_s3 + $0xe8] sm:$0xff] (%p38_p0) }
  0x15   :  { %v503_v3 = vld [vmem:[%s1636_s3 + $0x150] sm:$0xff] (%p38_p0) }
  0x16   : > { %160 = vperm.xlu1 %1053, %v1163_v8   ;;  %155 = vperm.xlu0 %1052, %v1158_v7   ;;  %v947_v7 = vpack.c.bf16 (%p38_p0), %v480_v5, %v479_v4  ;;  %v493_v8 = vld [vmem:[%s1636_s3 + $0x100] sm:$0xff] (%p38_p0)  ;;  %v504_v4 = vld [vmem:[%s1636_s3 + $0x158] sm:$0xff] (%p38_p0) }
  0x17   :  { %976 = vmatprep.subr.bf16.mxu1 (%p38_p0), %v975_v6  ;;  %v521_v6 = vld [vmem:[%s1636_s3 + $0x1e0] sm:$0xff] (%p38_p0) }
  0x1a   : > { %170 = vperm.xlu1 %1053, %v1173_v10   ;;  %165 = vperm.xlu0 %1052, %v1168_v9   ;;  %v494_v9 = vld [vmem:[%s1636_s3 + $0x108] sm:$0xff] (%p38_p0)  ;;  %v463_v10 = vld [vmem:[%s1636_s3 + $0x10] sm:$0xff] (%p38_p0) }
  0x1e   : > { %180 = vperm.xlu1 %1053, %v1183_v12   ;;  %175 = vperm.xlu0 %1052, %v1178_v11   ;;  %v977_v11 = vpack.c.bf16 (%p38_p0), %v494_v9, %v493_v8  ;;  %v464_v12 = vld [vmem:[%s1636_s3 + $0x18] sm:$0xff] (%p38_p0)  ;;  %v473_v9 = vld [vmem:[%s1636_s3 + $0x60] sm:$0xff] (%p38_p0) }
  0x20   :  { %978 = vmatpush3.bf16.msra.mxu1 (%p38_p0), %v977_v11  ;;  %v997_v11 = vpack.c.bf16 (%p38_p0), %v504_v4, %v503_v3  ;;  %v548_v3 = vld [vmem:[%s1636_s3 + $0x2b8] sm:$0xff] (%p38_p0) }
  0x22   : > { %185 = vperm.xlu0 %1052, %v1188_v13   ;;  %v511_v13 = vld [vmem:[%s1636_s3 + $0x190] sm:$0xff] (%p38_p0) }
  0x89   : > { %v136_v22 = vpop.permute.xlu1 %135  ;;  %v126_v23 = vpop.permute.xlu0 %125 }
  0x8a   : > { %v200_v30 = vmul.f32 %v136_v22, %v57_v15  ;;  %v201_v31 = vmul.f32 %v136_v22, %v58_v16  ;;  %v202_v35 = vmul.f32 %v136_v22, %v59_v17  ;;  %v203_v36 = vmul.f32 %v136_v22, %v60_v18  ;;  %v76_v15 = vld [vmem:[%s1212_s23 + $0xf8] sm:$0xff] }
  0x8b   : > { %v204_v37 = vmul.f32 %v136_v22, %v61_v19  ;;  %v205_v38 = vmul.f32 %v136_v22, %v62_v20  ;;  %v188_v42 = vmul.f32 %v126_v23, %v45_v21  ;;  %v189_v43 = vmul.f32 %v126_v23, %v46_v24  ;;  %v77_v21 = vld [vmem:[%s1212_s23 + $0x100] sm:$0xff]  ;;  %v78_v22 = vld [vmem:[%s1212_s23 + $0x108] sm:$0xff] }
  0x8c   : > { %v190_v44 = vmul.f32 %v126_v23, %v47_v25  ;;  %v191_v45 = vmul.f32 %v126_v23, %v48_v26  ;;  %v192_v51 = vmul.f32 %v126_v23, %v49_v27  ;;  %v193_v52 = vmul.f32 %v126_v23, %v50_v28  ;;  %v79_v28 = vld [vmem:[%s1212_s23 + $0x110] sm:$0xff] }
  0x8d   : > { %v141_v46 = vpop.permute.xlu1 %140  ;;  %v131_v47 = vpop.permute.xlu0 %130 }
  0x8e   : > { %v206_v55 = vmul.f32 %v141_v46, %v63_v29  ;;  %v207_v56 = vmul.f32 %v141_v46, %v64_v32  ;;  %v208_v57 = vmul.f32 %v141_v46, %v65_v33  ;;  %v209_v58 = vmul.f32 %v141_v46, %v66_v34  ;;  %v80_v29 = vld [vmem:[%s1212_s23 + $0x118] sm:$0xff]  ;;  %v69_v32 = vld [vmem:[%s1212_s23 + $0xc0] sm:$0xff] }
  0x8f   : > { %v194_v59 = vmul.f32 %v131_v47, %v51_v39  ;;  %v195_v60 = vmul.f32 %v131_v47, %v52_v40  ;;  %v196_v61 = vmul.f32 %v131_v47, %v53_v41  ;;  %v197_v62 = vmul.f32 %v131_v47, %v54_v48  ;;  %v70_v41 = vld [vmem:[%s1212_s23 + $0xc8] sm:$0xff]  ;;  %v73_v48 = vld [vmem:[%s1212_s23 + $0xe0] sm:$0xff] }
  0x90   : > { %v198_v63 = vmul.f32 %v131_v47, %v55_v49  ;;  %v199_v0 = vmul.f32 %v131_v47, %v56_v50  ;;  %v210_v16 = vmul.f32 %v141_v46, %v67_v53  ;;  %v211_v17 = vmul.f32 %v141_v46, %v68_v54  ;;  %v74_v49 = vld [vmem:[%s1212_s23 + $0xe8] sm:$0xff] }
  0x91   : > { %v266_v18 = vadd.f32 %v194_v59, %v188_v42  ;;  %v286_v19 = vadd.f32 %v195_v60, %v189_v43  ;;  %v151_v20 = vpop.permute.xlu1 %150  ;;  %v146_v23 = vpop.permute.xlu0 %145  ;;  %v305_v24 = vadd.f32 %v196_v61, %v190_v44  ;;  %v324_v25 = vadd.f32 %v197_v62, %v191_v45  ;;  %v71_v42 = vld [vmem:[%s1212_s23 + $0xd0] sm:$0xff]  ;;  %v72_v43 = vld [vmem:[%s1212_s23 + $0xd8] sm:$0xff] }
  0x92   : > { %v343_v26 = vadd.f32 %v198_v63, %v192_v51  ;;  %v362_v27 = vadd.f32 %v199_v0, %v193_v52  ;;  %v1245_v39 = vmul.f32 %v151_v20, %v75_v14  ;;  %v1247_v40 = vmul.f32 %v151_v20, %v76_v15  ;;  %v89_v0 = vld [vmem:[%s1212_s23 + $0x160] sm:$0xff]  ;;  %v90_v14 = vld [vmem:[%s1212_s23 + $0x168] sm:$0xff] }
  0x93   : > { %v267_v33 = vadd.f32 %v266_v18, %v200_v30  ;;  %v287_v34 = vadd.f32 %v286_v19, %v201_v31  ;;  %v306_v46 = vadd.f32 %v305_v24, %v202_v35  ;;  %v325_v44 = vadd.f32 %v324_v25, %v203_v36  ;;  %v87_v35 = vld [vmem:[%s1212_s23 + $0x150] sm:$0xff]  ;;  %v88_v36 = vld [vmem:[%s1212_s23 + $0x158] sm:$0xff]  ;;  %v81_v24 = vld [vmem:[%s1212_s23 + $0x120] sm:$0xff] }
  0x94   : > { %v344_v45 = vadd.f32 %v343_v26, %v204_v37  ;;  %v363_v47 = vadd.f32 %v362_v27, %v205_v38  ;;  %v220_v50 = vmul.f32 %v151_v20, %v77_v21  ;;  %v221_v51 = vmul.f32 %v151_v20, %v78_v22  ;;  %v91_v21 = vld [vmem:[%s1212_s23 + $0x170] sm:$0xff]  ;;  %v92_v22 = vld [vmem:[%s1212_s23 + $0x178] sm:$0xff] }
  0x95   : > { %v222_v30 = vmul.f32 %v151_v20, %v79_v28  ;;  %v223_v31 = vmul.f32 %v151_v20, %v80_v29  ;;  %v212_v52 = vmul.f32 %v146_v23, %v69_v32  ;;  %v213_v53 = vmul.f32 %v146_v23, %v70_v41  ;;  %v161_v60 = vpop.permute.xlu1 %160  ;;  %v156_v37 = vpop.permute.xlu0 %155  ;;  %v84_v28 = vld [vmem:[%s1212_s23 + $0x138] sm:$0xff]  ;;  %v86_v32 = vld [vmem:[%s1212_s23 + $0x148] sm:$0xff] }
  0x96   : > { %v214_v54 = vmul.f32 %v146_v23, %v71_v42  ;;  %v215_v59 = vmul.f32 %v146_v23, %v72_v43  ;;  %v216_v38 = vmul.f32 %v146_v23, %v73_v48  ;;  %v217_v61 = vmul.f32 %v146_v23, %v74_v49  ;;  %v99_v48 = vld [vmem:[%s1212_s23 + $0x1b0] sm:$0xff]  ;;  %v100_v49 = vld [vmem:[%s1212_s23 + $0x1b8] sm:$0xff] }
  0x97   : > { %v268_v62 = vadd.f32 %v267_v33, %v206_v55  ;;  %v288_v63 = vadd.f32 %v287_v34, %v207_v56  ;;  %v307_v15 = vadd.f32 %v306_v46, %v208_v57  ;;  %v326_v18 = vadd.f32 %v325_v44, %v209_v58  ;;  %v82_v55 = vld [vmem:[%s1212_s23 + $0x128] sm:$0xff]  ;;  %v83_v56 = vld [vmem:[%s1212_s23 + $0x130] sm:$0xff] }
  0x98   : > { %v345_v19 = vadd.f32 %v344_v45, %v210_v16  ;;  %v364_v20 = vadd.f32 %v363_v47, %v211_v17  ;;  %v1261_v27 = vmul.f32 %v161_v60, %v87_v35  ;;  %v1263_v23 = vmul.f32 %v161_v60, %v88_v36  ;;  %v85_v17 = vld [vmem:[%s1212_s23 + $0x140] sm:$0xff]  ;;  %v102_v36 = vld [vmem:[%s1212_s23 + $0x1c8] sm:$0xff] }
  0x99   : > { %v269_v25 = vadd.f32 %v268_v62, %v212_v52  ;;  %v289_v26 = vadd.f32 %v288_v63, %v213_v53  ;;  %v308_v29 = vadd.f32 %v307_v15, %v214_v54  ;;  %v327_v57 = vadd.f32 %v326_v18, %v215_v59  ;;  %v171_v47 = vpop.permute.xlu1 %170  ;;  %v166_v52 = vpop.permute.xlu0 %165  ;;  %v93_v15 = vld [vmem:[%s1212_s23 + $0x180] sm:$0xff] }
  0x9a   : > { %v346_v58 = vadd.f32 %v345_v19, %v216_v38  ;;  %v365_v16 = vadd.f32 %v364_v20, %v217_v61  ;;  %v232_v33 = vmul.f32 %v161_v60, %v89_v0  ;;  %v233_v34 = vmul.f32 %v161_v60, %v90_v14  ;;  %v103_v0 = vld [vmem:[%s1212_s23 + $0x1d0] sm:$0xff]  ;;  %v104_v14 = vld [vmem:[%s1212_s23 + $0x1d8] sm:$0xff]  ;;  %v94_v20 = vld [vmem:[%s1212_s23 + $0x188] sm:$0xff] }
  0x9b   : > { %v234_v41 = vmul.f32 %v161_v60, %v91_v21  ;;  %v235_v42 = vmul.f32 %v161_v60, %v92_v22  ;;  %v224_v43 = vmul.f32 %v156_v37, %v81_v24  ;;  %v225_v46 = vmul.f32 %v156_v37, %v82_v55  ;;  %v101_v60 = vld [vmem:[%s1212_s23 + $0x1c0] sm:$0xff]  ;;  %v96_v21 = vld [vmem:[%s1212_s23 + $0x198] sm:$0xff]  ;;  %v98_v24 = vld [vmem:[%s1212_s23 + $0x1a8] sm:$0xff] }
  0x9c   : > { %v226_v44 = vmul.f32 %v156_v37, %v83_v56  ;;  %v227_v45 = vmul.f32 %v156_v37, %v84_v28  ;;  %v228_v53 = vmul.f32 %v156_v37, %v85_v17  ;;  %v229_v54 = vmul.f32 %v156_v37, %v86_v32  ;;  %v111_v17 = vld [vmem:[%s1212_s23 + $0x210] sm:$0xff]  ;;  %v112_v32 = vld [vmem:[%s1212_s23 + $0x218] sm:$0xff] }
  0x9d   : > { %v270_v59 = vadd.f32 %v269_v25, %v1245_v39  ;;  %v290_v35 = vadd.f32 %v289_v26, %v1247_v40  ;;  %v309_v38 = vadd.f32 %v308_v29, %v220_v50  ;;  %v328_v61 = vadd.f32 %v327_v57, %v221_v51  ;;  %v95_v40 = vld [vmem:[%s1212_s23 + $0x190] sm:$0xff] }
  0x9e   : > { %v347_v62 = vadd.f32 %v346_v58, %v222_v30  ;;  %v366_v63 = vadd.f32 %v365_v16, %v223_v31  ;;  %v1279_v19 = vmul.f32 %v171_v47, %v99_v48  ;;  %v1281_v39 = vmul.f32 %v171_v47, %v100_v49  ;;  %v97_v31 = vld [vmem:[%s1212_s23 + $0x1a0] sm:$0xff]  ;;  %v181_v16 = vpop.permute.xlu1 %180  ;;  %v114_v49 = vld [vmem:[%s1212_s23 + $0x228] sm:$0xff] }
  0x9f   : > { %v271_v18 = vadd.f32 %v270_v59, %v224_v43  ;;  %v291_v37 = vadd.f32 %v290_v35, %v225_v46  ;;  %v310_v22 = vadd.f32 %v309_v38, %v226_v44  ;;  %v329_v50 = vadd.f32 %v328_v61, %v227_v45  ;;  %v176_v43 = vpop.permute.xlu0 %175  ;;  %v105_v38 = vld [vmem:[%s1212_s23 + $0x1e0] sm:$0xff] }
  0xa0   : > { %v348_v51 = vadd.f32 %v347_v62, %v228_v53  ;;  %v367_v30 = vadd.f32 %v366_v63, %v229_v54  ;;  %v244_v25 = vmul.f32 %v171_v47, %v101_v60  ;;  %v245_v26 = vmul.f32 %v171_v47, %v102_v36  ;;  %v115_v60 = vld [vmem:[%s1212_s23 + $0x230] sm:$0xff]  ;;  %v116_v36 = vld [vmem:[%s1212_s23 + $0x238] sm:$0xff]  ;;  %v106_v63 = vld [vmem:[%s1212_s23 + $0x1e8] sm:$0xff] }
  0xa1   : > { %v246_v55 = vmul.f32 %v171_v47, %v103_v0  ;;  %v247_v56 = vmul.f32 %v171_v47, %v104_v14  ;;  %v236_v28 = vmul.f32 %v166_v52, %v93_v15  ;;  %v237_v29 = vmul.f32 %v166_v52, %v94_v20  ;;  %v113_v47 = vld [vmem:[%s1212_s23 + $0x220] sm:$0xff]  ;;  %v108_v0 = vld [vmem:[%s1212_s23 + $0x1f8] sm:$0xff] }
  0xa2   : > { %v238_v57 = vmul.f32 %v166_v52, %v95_v40  ;;  %v239_v58 = vmul.f32 %v166_v52, %v96_v21  ;;  %v240_v46 = vmul.f32 %v166_v52, %v97_v31  ;;  %v241_v44 = vmul.f32 %v166_v52, %v98_v24  ;;  %v117_v31 = vld [vmem:[%s1212_s23 + $0x240] sm:$0x7f]  ;;  %v118_v24 = vld [vmem:[%s1212_s23 + $0x248] sm:$0x7f] }
  0xa3   : > { %v272_v45 = vadd.f32 %v271_v18, %v1261_v27  ;;  %v292_v48 = vadd.f32 %v291_v37, %v1263_v23  ;;  %v311_v53 = vadd.f32 %v310_v22, %v232_v33  ;;  %v330_v54 = vadd.f32 %v329_v50, %v233_v34  ;;  %v107_v23 = vld [vmem:[%s1212_s23 + $0x1f0] sm:$0xff]  ;;  %v110_v18 = vld [vmem:[%s1212_s23 + $0x208] sm:$0xff] }
  0xa4   : > { %v349_v59 = vadd.f32 %v348_v51, %v234_v41  ;;  %v368_v35 = vadd.f32 %v367_v30, %v235_v42  ;;  %v254_v27 = vmul.f32 %v181_v16, %v111_v17  ;;  %v255_v62 = vmul.f32 %v181_v16, %v112_v32  ;;  %v109_v41 = vld [vmem:[%s1212_s23 + $0x200] sm:$0xff]  ;;  %v186_v30 = vpop.permute.xlu0 %185  ;;  %v119_v17 = vld [vmem:[%s1212_s23 + $0x250] sm:$0x7f] }
  0xa5   : > { %v273_v52 = vadd.f32 %v272_v45, %v236_v28  ;;  %v293_v61 = vadd.f32 %v292_v48, %v237_v29  ;;  %v312_v14 = vadd.f32 %v311_v53, %v238_v57  ;;  %v331_v15 = vadd.f32 %v330_v54, %v239_v58  ;;  %v120_v45 = vld [vmem:[%s1212_s23 + $0x258] sm:$0x7f]  ;;  %v121_v48 = vld [vmem:[%s1212_s23 + $0x260] sm:$0x7f] }
  0xa6   : > { %v350_v33 = vadd.f32 %v349_v59, %v240_v46  ;;  %v369_v34 = vadd.f32 %v368_v35, %v241_v44  ;;  %v256_v42 = vmul.f32 %v181_v16, %v113_v47  ;;  %v257_v37 = vmul.f32 %v181_v16, %v114_v49  ;;  %v122_v47 = vld [vmem:[%s1212_s23 + $0x268] sm:$0x7f] }
  0xa7   : > { %v258_v20 = vmul.f32 %v181_v16, %v115_v60  ;;  %v259_v40 = vmul.f32 %v181_v16, %v116_v36  ;;  %v248_v21 = vmul.f32 %v176_v43, %v105_v38  ;;  %v249_v22 = vmul.f32 %v176_v43, %v106_v63 }
  0xa8   : > { %v250_v50 = vmul.f32 %v176_v43, %v107_v23  ;;  %v251_v51 = vmul.f32 %v176_v43, %v108_v0  ;;  %v252_v28 = vmul.f32 %v176_v43, %v109_v41  ;;  %v253_v29 = vmul.f32 %v176_v43, %v110_v18 }
  0xa9   : > { %v274_v57 = vadd.f32 %v273_v52, %v1279_v19  ;;  %v294_v58 = vadd.f32 %v293_v61, %v1281_v39  ;;  %v313_v32 = vadd.f32 %v312_v14, %v244_v25  ;;  %v332_v46 = vadd.f32 %v331_v15, %v245_v26 }
  0xaa   : > { %v351_v16 = vadd.f32 %v350_v33, %v246_v55  ;;  %v370_v44 = vadd.f32 %v369_v34, %v247_v56  ;;  %v260_v54 = vmul.f32 %v186_v30, %v117_v31  ;;  %v261_v59 = vmul.f32 %v186_v30, %v118_v24 }
  0xab   : > { %v275_v49 = vadd.f32 %v274_v57, %v248_v21  ;;  %v295_v53 = vadd.f32 %v294_v58, %v249_v22  ;;  %v314_v35 = vadd.f32 %v313_v32, %v250_v50  ;;  %v333_v60 = vadd.f32 %v332_v46, %v251_v51 }
  0xac   : > { %v352_v36 = vadd.f32 %v351_v16, %v252_v28  ;;  %v371_v43 = vadd.f32 %v370_v44, %v253_v29  ;;  %v262_v38 = vmul.f32 %v186_v30, %v119_v17  ;;  %v263_v19 = vmul.f32 %v186_v30, %v120_v45 }
  0xad   : > { %v264_v52 = vmul.f32 %v186_v30, %v121_v48  ;;  %v265_v39 = vmul.f32 %v186_v30, %v122_v47  ;;  %v276_v61 = vadd.f32 %v275_v49, %v254_v27  ;;  %v278_v25 = vsel %vm277_vm0, %v260_v54, 0.0 }
  0xae   : > { %v296_v26 = vadd.f32 %v295_v53, %v255_v62  ;;  %v297_v55 = vsel %vm277_vm0, %v261_v59, 0.0  ;;  %v315_v56 = vadd.f32 %v314_v35, %v256_v42  ;;  %v316_v63 = vsel %vm277_vm0, %v262_v38, 0.0 }
  0xaf   : > { %v334_v23 = vadd.f32 %v333_v60, %v257_v37  ;;  %v335_v0 = vsel %vm277_vm0, %v263_v19, 0.0  ;;  %v279_v14 = vadd.f32 %v278_v25, %v276_v61  ;;  %v353_v33 = vadd.f32 %v352_v36, %v258_v20 }
  0xb0   : > { %v298_v15 = vadd.f32 %v297_v55, %v296_v26  ;;  %v354_v34 = vsel %vm277_vm0, %v264_v52, 0.0  ;;  %v317_v41 = vadd.f32 %v316_v63, %v315_v56  ;;  %v372_v21 = vadd.f32 %v371_v43, %v259_v40 }
  0xb1   : > { %v336_v18 = vadd.f32 %v335_v0, %v334_v23  ;;  %v373_v27 = vsel %vm277_vm0, %v265_v39, 0.0  ;;  %v280_v22 = vrot.slane %v279_v14, 4  ;;  %v355_v50 = vadd.f32 %v354_v34, %v353_v33 }
  0xb2   : > { %v299_v62 = vrot.slane %v298_v15, 4  ;;  %v393_v51 = vlaneseq  ;;  %v318_v42 = vrot.slane %v317_v41, 4  ;;  %v374_v31 = vadd.f32 %v373_v27, %v372_v21 }
  0xb3   : > { %v337_v30 = vrot.slane %v336_v18, 4  ;;  %v1088_v37 = vmov 1966171168   ;;  %v281_v28 = vadd.f32 %v280_v22, %v279_v14  ;;  %v356_v57 = vrot.slane %v355_v50, 4 }
  0xb4   : > { %v391_v24 = vunpack.c.l.s4 %v1088_v37  ;;  %v300_v29 = vadd.f32 %v299_v62, %v298_v15  ;;  %v319_v20 = vadd.f32 %v318_v42, %v317_v41  ;;  %v375_v17 = vrot.slane %v374_v31, 4  ;;  %v835_v42 = vld [vmem:[#allocation3] ss:$0 sm:$0xff] (%p38_p0) }
  0xb5   : > { %v338_v58 = vadd.f32 %v337_v30, %v336_v18  ;;  %v282_v32 = vrot.slane %v281_v28, 2  ;;  %v357_v40 = vadd.f32 %v356_v57, %v355_v50  ;;  %v1316_v16 = vshrl.u32 %v393_v51, 7  ;;  %v477_v30 = vld [vmem:[%s1636_s3 + $0x80] sm:$0xff] (%p38_p0) }
  0xb6   : > { %v301_v46 = vrot.slane %v300_v29, 2  ;;  %v320_v44 = vrot.slane %v319_v20, 2  ;;  %v376_v48 = vadd.f32 %v375_v17, %v374_v31  ;;  %v392_v47 = vunpack.c.0.s8 %v391_v24  ;;  %v478_v31 = vld [vmem:[%s1636_s3 + $0x88] sm:$0xff] (%p38_p0)  ;;  %v461_v24 = vld [vmem:[%s1636_s3] sm:$0xff] (%p38_p0) }
  0xb7   : > { %v339_v45 = vrot.slane %v338_v58, 2  ;;  %v283_v49 = vadd.f32 %v282_v32, %v281_v28  ;;  %v358_v54 = vrot.slane %v357_v40, 2  ;;  %vm430_vm1 = vcmp.lt.s32.totalorder %v393_v51, 768  ;;  %v462_v28 = vld [vmem:[%s1636_s3 + $0x8] sm:$0xff] (%p38_p0)  ;;  %v495_v32 = vld [vmem:[%s1636_s3 + $0x110] sm:$0xff] (%p38_p0) }
  0xb8   : > { %v302_v53 = vadd.f32 %v301_v46, %v300_v29  ;;  %v321_v59 = vadd.f32 %v320_v44, %v319_v20  ;;  %v377_v60 = vrot.slane %v376_v48, 2  ;;  %v395_v61 = vsub.s32 %v392_v47, %v1316_v16  ;;  %v512_v29 = vld [vmem:[%s1636_s3 + $0x198] sm:$0xff] (%p38_p0)  ;;  %v482_v17 = vld [vmem:[%s1636_s3 + $0xa8] sm:$0xff] (%p38_p0)  ;;  %v465_v44 = vld [vmem:[%s1636_s3 + $0x20] sm:$0xff] (%p38_p0) }
  0xb9   : > { %v340_v35 = vadd.f32 %v339_v45, %v338_v58  ;;  %v284_v36 = vrot.slane %v283_v49, 1  ;;  %v359_v38 = vadd.f32 %v358_v54, %v357_v40  ;;  %v1089_v37 = vmov (%p38_p0), 0   ;;  %v481_v58 = vld [vmem:[%s1636_s3 + $0xa0] sm:$0xff] (%p38_p0)  ;;  %v496_v40 = vld [vmem:[%s1636_s3 + $0x118] sm:$0xff] (%p38_p0)  ;;  %v466_v45 = vld [vmem:[%s1636_s3 + $0x28] sm:$0xff] (%p38_p0) }
  0xba   : > { %v303_v43 = vrot.slane %v302_v53, 1  ;;  %v322_v19 = vrot.slane %v321_v59, 1  ;;  %v378_v39 = vadd.f32 %v377_v60, %v376_v48  ;;  %1054 = vset.pattern.permute.xlu0 (%p38_p0), %v1089_v37  ;;  %v943_v51 = vpack.c.bf16 (%p38_p0), %v478_v31, %v477_v30  ;;  %v513_v47 = vld [vmem:[%s1636_s3 + $0x1a0] sm:$0xff] (%p38_p0)  ;;  %v520_v30 = vld [vmem:[%s1636_s3 + $0x1d8] sm:$0xff] (%p38_p0)  ;;  %v471_v37 = vld [vmem:[%s1636_s3 + $0x50] sm:$0xff] (%p38_p0) }
  0xbb   : > { %v341_v52 = vrot.slane %v340_v35, 1  ;;  %v285_v25 = vadd.f32 %v284_v36, %v283_v49  ;;  %v360_v55 = vrot.slane %v359_v38, 1  ;;  %450 = vperm.xlu0 (%p38_p0), %1054, %v835_v42   ;;  %v945_v2 = vpack.c.bf16 (%p38_p0), %v462_v28, %v461_v24  ;;  %v514_v49 = vld [vmem:[%s1636_s3 + $0x1a8] sm:$0xff] (%p38_p0)  ;;  %v497_v60 = vld [vmem:[%s1636_s3 + $0x120] sm:$0xff] (%p38_p0)  ;;  %v519_v42 = vld [vmem:[%s1636_s3 + $0x1d0] sm:$0xff] (%p38_p0) }
  0xbc   : > { %v304_v26 = vadd.f32 %v303_v43, %v302_v53  ;;  %v323_v56 = vadd.f32 %v322_v19, %v321_v59  ;;  %v379_v23 = vrot.slane %v378_v39, 1  ;;  %944 = vmatprep.subr.bf16.mxu0 (%p38_p0), %v943_v51  ;;  %v949_v57 = vpack.c.bf16 (%p38_p0), %v464_v12, %v463_v10  ;;  %v483_v53 = vld [vmem:[%s1636_s3 + $0xb0] sm:$0xff] (%p38_p0)  ;;  %v498_v36 = vld [vmem:[%s1636_s3 + $0x128] sm:$0xff] (%p38_p0)  ;;  %v468_v19 = vld [vmem:[%s1636_s3 + $0x38] sm:$0xff] (%p38_p0) }
  0xbd   : > { %v342_v63 = vadd.f32 %v341_v52, %v340_v35  ;;  %v361_v0 = vadd.f32 %v360_v55, %v359_v38  ;;  %946 = vmatpush3.bf16.msra.mxu0 (%p38_p0), %v945_v2  ;;  %v979_v20 = vpack.c.bf16 (%p38_p0), %v512_v29, %v511_v13  ;;  %v951_v46 = vpack.c.bf16 (%p38_p0), %v482_v17, %v481_v58  ;;  %v484_v35 = vld [vmem:[%s1636_s3 + $0xb8] sm:$0xff] (%p38_p0)  ;;  %v467_v38 = vld [vmem:[%s1636_s3 + $0x30] sm:$0xff] (%p38_p0)  ;;  %v489_v28 = vld [vmem:[%s1636_s3 + $0xe0] sm:$0xff] (%p38_p0) }
  0xbe   : > { %v387_v14 = vcombine.low %v285_v25, %v304_v26  ;;  %v380_v15 = vadd.f32 %v379_v23, %v378_v39  ;;  %948 = vmatprep.subr.bf16.mxu0 (%p38_p0), %v947_v7  ;;  %v981_v48 = vpack.c.bf16 (%p38_p0), %v496_v40, %v495_v32  ;;  %v953_v54 = vpack.c.bf16 (%p38_p0), %v466_v45, %v465_v44  ;;  %v515_v52 = vld [vmem:[%s1636_s3 + $0x1b0] sm:$0xff] (%p38_p0)  ;;  %v485_v25 = vld [vmem:[%s1636_s3 + $0xc0] sm:$0xff] (%p38_p0)  ;;  %v486_v26 = vld [vmem:[%s1636_s3 + $0xc8] sm:$0xff] (%p38_p0) }
  0xbf   : > { %v388_v33 = vcombine.low %v323_v56, %v342_v63  ;;  %980 = vmatprep.subr.bf16.mxu1 (%p38_p0), %v979_v20  ;;  %v983_v59 = vpack.c.bf16 (%p38_p0), %v514_v49, %v513_v47  ;;  %v955_v43 = vpack.c.bf16 (%p38_p0), %v484_v35, %v483_v53  ;;  %v985_v39 = vpack.c.bf16 (%p38_p0), %v498_v36, %v497_v60  ;;  %v499_v56 = vld [vmem:[%s1636_s3 + $0x130] sm:$0xff] (%p38_p0)  ;;  %v500_v63 = vld [vmem:[%s1636_s3 + $0x138] sm:$0xff] (%p38_p0)  ;;  %v522_v7 = vld [vmem:[%s1636_s3 + $0x1e8] sm:$0xff] (%p38_p0) }
  0xc0   : > { %v396_v34 = vrot.slane %v387_v14, %v395_v61  ;;  %v389_v41 = vcombine.low %v361_v0, %v380_v15  ;;  %982 = vmatpush3.bf16.msra.mxu1 (%p38_p0), %v981_v48  ;;  %v957_v23 = vpack.c.bf16 (%p38_p0), %v468_v19, %v467_v38  ;;  %v517_v0 = vld [vmem:[%s1636_s3 + $0x1c0] sm:$0xff] (%p38_p0)  ;;  %v518_v14 = vld [vmem:[%s1636_s3 + $0x1c8] sm:$0xff] (%p38_p0)  ;;  %v959_v15 = vpack.c.bf16 (%p38_p0), %v486_v26, %v485_v25  ;;  %v472_v51 = vld [vmem:[%s1636_s3 + $0x58] sm:$0xff] (%p38_p0) }
  0xc1   : > { %v403_v18 = vrot.slane %v388_v33, %v395_v61  ;;  %950 = vmatpush3.bf16.msra.mxu0 (%p38_p0), %v949_v57  ;;  %984 = vmatprep.subr.bf16.mxu1 (%p38_p0), %v983_v59  ;;  %v469_v33 = vld [vmem:[%s1636_s3 + $0x40] sm:$0xff] (%p38_p0)  ;;  %v995_v2 = vpack.c.bf16 (%p38_p0), %v520_v30, %v519_v42  ;;  %v965_v5 = vpack.c.bf16 (%p38_p0), %v472_v51, %v471_v37  ;;  %v474_v10 = vld [vmem:[%s1636_s3 + $0x68] sm:$0xff] (%p38_p0)  ;;  %v491_v12 = vld [vmem:[%s1636_s3 + $0xf0] sm:$0xff] (%p38_p0)  ;;  %v1090_v36 = vmov (%p38_p0), 1983009808  }
  0xc2   : > { %v410_v21 = vrot.slane %v389_v41, %v395_v61  ;;  %952 = vmatprep.subr.bf16.mxu0 (%p38_p0), %v951_v46  ;;  %v989_v41 = vpack.c.bf16 (%p38_p0), %v500_v63, %v499_v56  ;;  %v967_v8 = vpack.c.bf16 (%p38_p0), %v490_v1, %v489_v28  ;;  %v492_v13 = vld [vmem:[%s1636_s3 + $0xf8] sm:$0xff] (%p38_p0)  ;;  %v999_v29 = vpack.c.bf16 (%p38_p0), %v522_v7, %v521_v6  ;;  %v505_v57 = vld [vmem:[%s1636_s3 + $0x160] sm:$0xff] (%p38_p0)  ;;  %v506_v20 = vld [vmem:[%s1636_s3 + $0x168] sm:$0xff] (%p38_p0) }
  0xc3   : > { %v411_v27 = vcombine.low %v396_v34, %v403_v18  ;;  %40 = sbr.rel (!%p38_p0) target bundleno = 8 (0x8), region = 49  ;;  %v470_v34 = vld [vmem:[%s1636_s3 + $0x48] sm:$0xff] (%p38_p0)  ;;  %v487_v18 = vld [vmem:[%s1636_s3 + $0xd0] sm:$0xff] (%p38_p0)  ;;  %v969_v58 = vpack.c.bf16 (%p38_p0), %v474_v10, %v473_v9  ;;  %v524_v32 = vld [vmem:[%s1636_s3 + $0x1f8] sm:$0xff] (%p38_p0)  ;;  %v971_v46 = vpack.c.bf16 (%p38_p0), %v492_v13, %v491_v12  ;;  %v1001_v45 = vpack.c.bf16 (%p38_p0), %v506_v20, %v505_v57 }
  0xc4   : > { %v425_v62 = vrot.slane %v410_v21, %v395_v61  ;;  %986 = vmatpush3.bf16.msra.mxu1 (%p38_p0), %v985_v39  ;;  %v488_v21 = vld [vmem:[%s1636_s3 + $0xd8] sm:$0xff] (%p38_p0)  ;;  %v523_v17 = vld [vmem:[%s1636_s3 + $0x1f0] sm:$0xff] (%p38_p0)  ;;  %v541_v48 = vld [vmem:[%s1636_s3 + $0x280] sm:$0xff] (%p38_p0) }
  0xc5   : > { %v418_v22 = vrot.slane %v411_v27, %v395_v61  ;;  %v516_v61 = vld [vmem:[%s1636_s3 + $0x1b8] sm:$0xff] (%p38_p0)  ;;  %954 = vmatpush3.bf16.msra.mxu0 (%p38_p0), %v953_v54  ;;  %v991_v27 = vpack.c.bf16 (%p38_p0), %v518_v14, %v517_v0  ;;  %v963_v31 = vpack.c.bf16 (%p38_p0), %v488_v21, %v487_v18  ;;  %v475_v40 = vld [vmem:[%s1636_s3 + $0x70] sm:$0xff] (%p38_p0)  ;;  %v542_v47 = vld [vmem:[%s1636_s3 + $0x288] sm:$0xff] (%p38_p0)  ;;  %v1003_v49 = vpack.c.bf16 (%p38_p0), %v524_v32, %v523_v17 }
  0xc6   :  { %v987_v55 = vpack.c.bf16 (%p38_p0), %v516_v61, %v515_v52  ;;  %956 = vmatprep.subr.bf16.mxu0 (%p38_p0), %v955_v43  ;;  %v476_v44 = vld [vmem:[%s1636_s3 + $0x78] sm:$0xff] (%p38_p0)  ;;  %v507_v53 = vld [vmem:[%s1636_s3 + $0x170] sm:$0xff] (%p38_p0)  ;;  %v1007_v35 = vpack.c.bf16 (%p38_p0), %v542_v47, %v541_v48  ;;  %v568_v43 = vunpack.c.l.s4 (%p38_p0), %v1090_v36  ;;  %v525_v0 = vld [vmem:[%s1636_s3 + $0x200] sm:$0xff] (%p38_p0) }
  0xc7   : > { %v426_v50 = vcombine.low %v418_v22, %v425_v62  ;;  %v501_v22 = vld [vmem:[%s1636_s3 + $0x140] sm:$0xff] (%p38_p0)  ;;  %v502_v62 = vld [vmem:[%s1636_s3 + $0x148] sm:$0xff] (%p38_p0)  ;;  %v508_v54 = vld [vmem:[%s1636_s3 + $0x178] sm:$0xff] (%p38_p0)  ;;  %v973_v59 = vpack.c.bf16 (%p38_p0), %v476_v44, %v475_v40 }
  0xc8   :  { %988 = vmatprep.subr.bf16.mxu1 (%p38_p0), %v987_v55  ;;  %v993_v24 = vpack.c.bf16 (%p38_p0), %v502_v62, %v501_v22  ;;  %v1005_v60 = vpack.c.bf16 (%p38_p0), %v508_v54, %v507_v53  ;;  %v569_v52 = vunpack.c.0.s8 (%p38_p0), %v568_v43  ;;  %v526_v14 = vld [vmem:[%s1636_s3 + $0x208] sm:$0xff] (%p38_p0)  ;;  %v527_v22 = vld [vmem:[%s1636_s3 + $0x210] sm:$0xff] (%p38_p0)  ;;  %v528_v62 = vld [vmem:[%s1636_s3 + $0x218] sm:$0xff] (%p38_p0) }
  0xc9   : > { %440 = vst.msk [vmem:[%s439_s2] ss:$2 sm:$0x3f] %vm430_vm1, %v426_v50  ;;  %958 = vmatpush3.bf16.msra.mxu0 (%p38_p0), %v957_v23  ;;  %v961_v50 = vpack.c.bf16 (%p38_p0), %v470_v34, %v469_v33  ;;  %990 = vmatpush3.bf16.msra.mxu1 (%p38_p0), %v989_v41  ;;  %v544_v41 = vld [vmem:[%s1636_s3 + $0x298] sm:$0xff] (%p38_p0)  ;;  %v1009_v21 = vpack.c.bf16 (%p38_p0), %v526_v14, %v525_v0  ;;  %v545_v30 = vld [vmem:[%s1636_s3 + $0x2a0] sm:$0xff] (%p38_p0)  ;;  %v530_v1 = vld [vmem:[%s1636_s3 + $0x228] sm:$0xff] (%p38_p0) }
  0xca   :  { %960 = vmatprep.subr.bf16.mxu0 %v959_v15  ;;  %992 = vmatprep.subr.bf16.mxu1 %v991_v27  ;;  %v572_v26 = vsub.s32 %v569_v52, %v1316_v16  ;;  %v543_v16 = vld [vmem:[%s1636_s3 + $0x290] sm:$0xff]  ;;  %v1013_v51 = vpack.c.bf16 %v528_v62, %v527_v22  ;;  %v529_v28 = vld [vmem:[%s1636_s3 + $0x220] sm:$0xff]  ;;  %v532_v7 = vld [vmem:[%s1636_s3 + $0x238] sm:$0xff] }
  0xcb   :  { %v1011_v42 = vpack.c.bf16 %v544_v41, %v543_v16  ;;  %v1017_v4 = vpack.c.bf16 %v530_v1, %v529_v28  ;;  %v531_v6 = vld [vmem:[%s1636_s3 + $0x230] sm:$0xff]  ;;  %v550_v9 = vld [vmem:[%s1636_s3 + $0x2c8] sm:$0xff]  ;;  %v533_v12 = vld [vmem:[%s1636_s3 + $0x240] sm:$0xff] }
  0xcc   :  { %v1021_v10 = vpack.c.bf16 %v532_v7, %v531_v6  ;;  %v534_v13 = vld [vmem:[%s1636_s3 + $0x248] sm:$0xff]  ;;  %v552_v57 = vld [vmem:[%s1636_s3 + $0x2d8] sm:$0xff]  ;;  %v535_v17 = vld [vmem:[%s1636_s3 + $0x250] sm:$0xff] }
  0xcd   :  { %962 = vmatpush3.bf16.msra.mxu0 %v961_v50  ;;  %994 = vmatpush3.bf16.msra.mxu1 %v993_v24  ;;  %v1025_v20 = vpack.c.bf16 %v534_v13, %v533_v12  ;;  %v536_v32 = vld [vmem:[%s1636_s3 + $0x258] sm:$0xff]  ;;  %v554_v40 = vld [vmem:[%s1636_s3 + $0x2e8] sm:$0xff]  ;;  %v537_v48 = vld [vmem:[%s1636_s3 + $0x260] sm:$0xff] }
  0xce   :  { %964 = vmatprep.subr.bf16.mxu0 %v963_v31  ;;  %996 = vmatprep.subr.bf16.mxu1 %v995_v2  ;;  %v546_v31 = vld [vmem:[%s1636_s3 + $0x2a8] sm:$0xff]  ;;  %v547_v2 = vld [vmem:[%s1636_s3 + $0x2b0] sm:$0xff]  ;;  %v1029_v44 = vpack.c.bf16 %v536_v32, %v535_v17  ;;  %v556_v53 = vld [vmem:[%s1636_s3 + $0x2f8] sm:$0xff] }
  0xcf   :  { %v1015_v24 = vpack.c.bf16 %v546_v31, %v545_v30  ;;  %v538_v47 = vld [vmem:[%s1636_s3 + $0x268] sm:$0xff] }
  0xd0   :  { %v441_v38 = vld [vmem:[#allocation2] sm:$0xff]  ;;  %v442_v19 = vld [vmem:[#allocation2 + $0x8] sm:$0xf]  ;;  %v1033_v54 = vpack.c.bf16 %v538_v47, %v537_v48 }
  0xd1   :  { %966 = vmatpush3.bf16.msra.mxu0 %v965_v5  ;;  %998 = vmatpush3.bf16.msra.mxu1 %v997_v11  ;;  %v1019_v5 = vpack.c.bf16 %v548_v3, %v547_v2 }
  0xd2   :  { %968 = vmatprep.subr.bf16.mxu0 %v967_v8  ;;  %1000 = vmatprep.subr.bf16.mxu1 %v999_v29  ;;  %v549_v8 = vld [vmem:[%s1636_s3 + $0x2c0] sm:$0xff]  ;;  %v551_v29 = vld [vmem:[%s1636_s3 + $0x2d0] sm:$0xff] }
  0xd3   :  { %v1023_v11 = vpack.c.bf16 %v550_v9, %v549_v8 }
  0xd5   :  { %970 = vmatpush3.bf16.msra.mxu0 %v969_v58  ;;  %1002 = vmatpush3.bf16.msra.mxu1 %v1001_v45  ;;  %v1027_v58 = vpack.c.bf16 %v552_v57, %v551_v29 }
  0xd6   :  { %972 = vmatprep.subr.bf16.mxu0 %v971_v46  ;;  %1004 = vmatprep.subr.bf16.mxu1 %v1003_v49  ;;  %v553_v46 = vld [vmem:[%s1636_s3 + $0x2e0] sm:$0xff]  ;;  %v555_v49 = vld [vmem:[%s1636_s3 + $0x2f0] sm:$0xff] }
  0xd7   :  { %v1031_v45 = vpack.c.bf16 %v554_v40, %v553_v46 }
  0xd9   :  { %974 = vmatpush3.bf16.msra.mxu0 %v973_v59  ;;  %1006 = vmatpush3.bf16.msra.mxu1 %v1005_v60  ;;  %v1035_v59 = vpack.c.bf16 %v556_v53, %v555_v49  ;;  %v540_v60 = vld [vmem:[%s1636_s3 + $0x278] sm:$0xff] }
  0xda   :  { %1008 = vmatprep.subr.bf16.mxu0 %v1007_v35  ;;  %v539_v35 = vld [vmem:[%s1636_s3 + $0x270] sm:$0xff]  ;;  %s1091_s3 = smov [#allocation4]  }
  0xdb   :  { %v1037_v36 = vpack.c.bf16 %v540_v60, %v539_v35  ;;  %s815_s27 = sshll.u32 %s1091_s3, 4  ;;  %s816_s27 = int_to_ptr.vmem [resolvable:$true] %s815_s27 }
  0xdc   :  { %s1055_s2 = scalar_lea.vmem %s816_s27, 32  ;;  %p1060_p2 = scmp.lt.s32.totalorder %s816_s27, %s816_s27 }
  0xdd   :  { %p1056_p1 = scmp.ne.s32.totalorder %s816_s27, %s1055_s2  ;;  %p1061_p3 = scmp.lt.s32.totalorder %s1055_s2, %s1055_s2 }
  0xdf   :  { %p1062_p4 = por %p1061_p3, %p1060_p2 }
  0xe1   :  { %p1063_p5 = pnand %p1062_p4, %p1056_p1 }
 0x13a   :  { %v451_v39 = vpop.permute.xlu0 %450 }
 0x13b   :  { %v453_v61 = vadd.f32 %v451_v39, %v441_v38  ;;  %v454_v25 = vadd.f32 %v451_v39, %v442_v19  ;;  %v836_v38 = vld [vmem:[%s1637_s4] ss:$0 sm:$0xff] }
 0x13d   :  { %vm455_vm2 = vcmp.ge.f32.partialorder %v453_v61, 0.0  ;;  %vm456_vm3 = vcmp.ge.f32.partialorder %v454_v25, 0.0  ;;  %v457_v55 = vmul.f32 0.01, %v453_v61  ;;  %v458_v56 = vmul.f32 0.01, %v454_v25 }
 0x13f   :  { %v460_v63 = vsel %vm456_vm3, %v454_v25, %v458_v56  ;;  %v459_v23 = vsel %vm455_vm2, %v453_v61, %v457_v55 }
 0x140   :  { %v573_v15 = vrot.slane %v459_v23, %v572_v26  ;;  %v566_v33 = vcombine.high %v459_v23, %v459_v23  ;;  %v1529_v34 = vrot.slane %v460_v63, %v572_v26 }
 0x142   :  { %v581_v18 = vcombine.high %v573_v15, %v573_v15  ;;  %v580_v27 = vrot.slane %v566_v33, %v572_v26  ;;  %v590_v37 = vcombine.high %v1529_v34, %v1529_v34 }
 0x144   :  { %661 = vmatprep.mubr.f32.mxu0 %v581_v18  ;;  %v582_v50 = vcombine.high %v580_v27, %v580_v27 }
 0x145   :  { %662 = vmatmul.mubr.f32.vlgmr.msra.gmra.mrb[0].mxu0 %v573_v15 }
 0x146   :  { %1010 = vmatpush3.bf16.msra.mxu0 %v1009_v21  ;;  %731 = vmatprep.mubr.f32.mxu1 %v582_v50 }
 0x147   :  { %801 = vmatprep.mubr.f32.mxu0 %v590_v37  ;;  %732 = vmatmul.mubr.f32.vlgmr.msra.gmra.mrb[0].mxu1 %v580_v27 }
 0x148   :  { %1012 = vmatprep.subr.bf16.mxu0 %v1011_v42 }
 0x14a   :  { %1014 = vmatpush3.bf16.msra.mxu0 %v1013_v51 }
 0x14b   :  { %1016 = vmatprep.subr.bf16.mxu0 %v1015_v24 }
 0x14e   :  { %1018 = vmatpush3.bf16.msra.mxu0 %v1017_v4 }
 0x14f   :  { %1020 = vmatprep.subr.bf16.mxu0 %v1019_v5 }
 0x152   :  { %1022 = vmatpush3.bf16.msra.mxu0 %v1021_v10 }
 0x153   :  { %1024 = vmatprep.subr.bf16.mxu0 %v1023_v11 }
 0x156   :  { %1026 = vmatpush3.bf16.msra.mxu0 %v1025_v20 }
 0x157   :  { %1028 = vmatprep.subr.bf16.mxu0 %v1027_v58 }
 0x15a   :  { %1030 = vmatpush3.bf16.msra.mxu0 %v1029_v44 }
 0x15b   :  { %1032 = vmatprep.subr.bf16.mxu0 %v1031_v45 }
 0x15e   :  { %1034 = vmatpush3.bf16.msra.mxu0 %v1033_v54 }
 0x15f   :  { %1036 = vmatprep.subr.bf16.mxu0 %v1035_v59 }
 0x162   :  { %1038 = vmatpush3.bf16.msra.mxu0 %v1037_v36 }
 0x165   :  { %802 = vmatmul.mubr.f32.vlgmr.msra.gmra.mrb[2].mxu0 %v1529_v34 }
 0x218   :  { %v870_v43 = vpop.f32.mrb[0].mxu0 }
 0x219   :  { %v871_v19 = vpop.f32.mrb[1].mxu0 }
 0x21a   :  { %v872_v52 = vadd.f32 %v871_v19, %v870_v43  ;;  %v905_v39 = vpop.f32.mrb[0].mxu1 }
 0x21b   :  { %v906_v61 = vpop.f32.mrb[1].mxu1 }
 0x21c   :  { %v664_v25 = vadd.f32 %v872_v52, %v836_v38  ;;  %v907_v26 = vadd.f32 %v906_v61, %v905_v39 }
 0x21e   :  { %v734_v55 = vadd.f32 %v907_v26, %v664_v25 }
 0x238   :  { %v940_v56 = vpop.f32.mrb[2].mxu0 }
 0x239   :  { %v941_v63 = vpop.f32.mrb[3].mxu0 }
 0x23a   :  { %v942_v23 = vadd.f32 %v941_v63, %v940_v56 }
 0x23c   :  { %v804_v0 = vadd.f32 %v942_v23, %v734_v55 }
 0x23e   :  { %808 = vst.msk [vmem:[#allocation4] sm:$0x3] %vm807_vm4, %v804_v0 }
 0x23f   :  { %1066 = shalt.err (!%p1063_p5)
}
 0x240   :  { %s1067_s29 = scalar_lea.hbm %s1638_s5, 32 }
 0x241   :  { %p1068_p6 = scmp.ne.s32.totalorder %s1638_s5, %s1067_s29  ;;  %p1071_p7 = scmp.lt.u32.totalorder %s1067_s29, %s1638_s5 }
 0x243   :  { %p1073_p8 = pnand %p1071_p7, %p1068_p6 }
 0x245   :  { %1076 = shalt.err (!%p1073_p8)
}
 0x246   :  { %818 = dma.vmem_to_hbm [thread:$0]  %s816_s27, 32, %s1638_s5, [#allocation5]  }
 0x247   :  { %1081 = dma.done.wait [#allocation5], 32  }
 0x248   :  { %1082 = vsyncadd [#allocation5], 4294967264 }
 0x249   :  { %822 = vsyncpa [#allocation5], 1 }

</bundles_post_ra>
